<compile_context>
chip_gen: v7x
topology: tpu7x:2x2x1
jax: 0.10.0
libtpu: 0.0.40
codegen_flags: <defaults>
</compile_context>

<pallas_src>
import functools

import jax
import jax.numpy as jnp
from jax.experimental import pallas as pl
from jax.experimental.pallas import tpu as pltpu

_LANE = 128
_SUBLANE = 8
# Default scoped VMEM is 32 MiB on v6e/v7x (16 MiB on v5e); 32 MiB is plenty here.
# TODO(synk): raise vmem_limit_bytes for very large hidden sizes (weights are VMEM resident).
_VMEM_LIMIT = 32 * 1024 * 1024


def _round_up(x, m):
    return (x + m - 1) // m * m


def _pad_gate_cols(w, H, Hp):
    """(D, 4H) -> (D, 4*Hp): each gate gets its own 128-lane-aligned Hp-wide
    segment; padding columns are zero (padded hidden lanes then stay exactly 0)."""
    D = w.shape[0]
    out = jnp.zeros((D, 4 * Hp), w.dtype)
    for g in range(4):
        out = out.at[:, g * Hp:g * Hp + H].set(w[:, g * H:(g + 1) * H])
    return out


def _row_tile(rows, cap=512):
    """Largest multiple-of-8 divisor of `rows` that is <= cap."""
    best = _SUBLANE
    d = _SUBLANE
    while d <= min(rows, cap):
        if rows % d == 0:
            best = d
        d += _SUBLANE
    return best


# ---------------------------------------------------------------------------
# Kernel 1: batched input projection  gates_x = x @ W_ih^T + (b_ih + b_hh)
# ---------------------------------------------------------------------------
def _input_proj_kernel(x_ref, wih_ref, b_ref, gx_ref):
    # (RT, D)bf16 @ (D, 4Hp)bf16 on the MXU, f32 accumulate, + f32 bias.
    gx_ref[...] = (
        jnp.dot(x_ref[...], wih_ref[...], preferred_element_type=jnp.float32)
        + b_ref[...])


def _input_projection(x_tbd, wih_bf16, bias_f32):
    """x_tbd: (Tp, Bp, D) f32. Returns gates_x: (Tp, Bp, 4*Hp) f32."""
    Tp, Bp, D = x_tbd.shape
    G4 = wih_bf16.shape[1]
    rows = Tp * Bp
    rt = _row_tile(rows)
    x2d = x_tbd.reshape(rows, D).astype(jnp.bfloat16)
    gx2d = pl.pallas_call(
        _input_proj_kernel,
        grid=(rows // rt,),
        in_specs=[
            pl.BlockSpec((rt, D), lambda r: (r, 0)),
            pl.BlockSpec((D, G4), lambda r: (0, 0)),
            pl.BlockSpec((1, G4), lambda r: (0, 0)),
        ],
        out_specs=pl.BlockSpec((rt, G4), lambda r: (r, 0)),
        out_shape=jax.ShapeDtypeStruct((rows, G4), jnp.float32),
        compiler_params=pltpu.CompilerParams(
            dimension_semantics=("parallel",),
            vmem_limit_bytes=_VMEM_LIMIT),
    )(x2d, wih_bf16, bias_f32)
    return gx2d.reshape(Tp, Bp, G4)


# ---------------------------------------------------------------------------
# Kernel 2: time-chunked recurrence (only h_prev @ W_hh^T per step)
# ---------------------------------------------------------------------------
def _lstm_recurrent_kernel(gx_ref, whh_ref, y_ref, hn_ref, cn_ref,
                           *, hidden_pad, time_chunk, seq_len, total_time):
    """grid = (batch_tiles, time_chunks); time axis is sequential ("arbitrary").

    gx_ref : (TC, BT, 4Hp) f32   precomputed x @ W_ih^T + bias
    whh_ref: (Hp, 4Hp)     bf16  recurrent weights (resident)
    y_ref  : (TC, BT, Hp)  f32   per-timestep hidden outputs
    hn_ref : (BT, Hp)      f32   final hidden state == recurrent carry (resident)
    cn_ref : (BT, Hp)      f32   final cell   state == recurrent carry (resident)
    """
    t_chunk = pl.program_id(1)

    @pl.when(t_chunk == 0)
    def _():
        hn_ref[...] = jnp.zeros_like(hn_ref)
        cn_ref[...] = jnp.zeros_like(cn_ref)

    Hp = hidden_pad
    whh = whh_ref[...]                         # loaded once per chunk
    mask_tail = total_time != seq_len          # static Python bool

    def step(tt, carry):
        h, c = carry                           # f32 (BT, Hp)
        gates = gx_ref[tt] + jnp.dot(h.astype(jnp.bfloat16), whh,
                                     preferred_element_type=jnp.float32)
        # PyTorch gate order [i, f, g, o]; each slice is 128-lane aligned.
        i_g = jax.nn.sigmoid(gates[:, 0 * Hp:1 * Hp])
        f_g = jax.nn.sigmoid(gates[:, 1 * Hp:2 * Hp])
        g_g = jnp.tanh(gates[:, 2 * Hp:3 * Hp])
        o_g = jax.nn.sigmoid(gates[:, 3 * Hp:4 * Hp])
        c_new = f_g * c + i_g * g_g
        h_new = o_g * jnp.tanh(c_new)
        y_ref[tt] = h_new.astype(y_ref.dtype)
        if mask_tail:   # only traced when the time axis was padded
            valid = (t_chunk * time_chunk + tt) < seq_len
            h_new = jnp.where(valid, h_new, h)
            c_new = jnp.where(valid, c_new, c)
        return h_new, c_new

    h, c = jax.lax.fori_loop(
        0, time_chunk, step, (hn_ref[...], cn_ref[...]),
        unroll=True if time_chunk <= 8 else 8)
    hn_ref[...] = h
    cn_ref[...] = c


def _lstm_recurrent(gx, whh_bf16, *, hidden_pad, seq_len, time_chunk, batch_tile):
    Tp, Bp, G4 = gx.shape
    n_bt = Bp // batch_tile
    n_tc = Tp // time_chunk
    kernel = functools.partial(
        _lstm_recurrent_kernel, hidden_pad=hidden_pad, time_chunk=time_chunk,
        seq_len=seq_len, total_time=Tp)
    y, h_n, c_n = pl.pallas_call(
        kernel,
        grid=(n_bt, n_tc),
        in_specs=[
            pl.BlockSpec((time_chunk, batch_tile, G4), lambda b, t: (t, b, 0)),
            pl.BlockSpec((hidden_pad, G4), lambda b, t: (0, 0)),
        ],
        out_specs=[
            pl.BlockSpec((time_chunk, batch_tile, hidden_pad),
                         lambda b, t: (t, b, 0)),
            pl.BlockSpec((batch_tile, hidden_pad), lambda b, t: (b, 0)),
            pl.BlockSpec((batch_tile, hidden_pad), lambda b, t: (b, 0)),
        ],
        out_shape=(
            jax.ShapeDtypeStruct((Tp, Bp, hidden_pad), jnp.float32),
            jax.ShapeDtypeStruct((Bp, hidden_pad), jnp.float32),
            jax.ShapeDtypeStruct((Bp, hidden_pad), jnp.float32),
        ),
        compiler_params=pltpu.CompilerParams(
            dimension_semantics=("parallel", "arbitrary"),
            vmem_limit_bytes=_VMEM_LIMIT),
    )(gx, whh_bf16)
    return y, h_n, c_n


# ---------------------------------------------------------------------------
# One LSTM layer = input-projection kernel + recurrent kernel
# ---------------------------------------------------------------------------
def _lstm_layer(x_tbd, w_ih, w_hh, b_ih, b_hh, *, H, Hp, seq_len, time_chunk,
                batch_tile):
    """x_tbd: (Tp, Bp, D) f32 (already batch/time padded). Returns padded
    y (Tp, Bp, Hp), h_n (Bp, Hp), c_n (Bp, Hp)."""
    D = x_tbd.shape[-1]

    wih_t = jnp.asarray(w_ih, jnp.float32).T            # (d_in, 4H)
    if wih_t.shape[0] < D:                               # layer > 0: pad to Hp rows
        wih_t = jnp.pad(wih_t, ((0, D - wih_t.shape[0]), (0, 0)))
    wih_p = _pad_gate_cols(wih_t, H, Hp).astype(jnp.bfloat16)      # (D, 4Hp)

    whh_t = jnp.asarray(w_hh, jnp.float32).T             # (H, 4H)
    whh_t = jnp.pad(whh_t, ((0, Hp - H), (0, 0)))
    whh_p = _pad_gate_cols(whh_t, H, Hp).astype(jnp.bfloat16)      # (Hp, 4Hp)

    bias = (jnp.asarray(b_ih, jnp.float32)
            + jnp.asarray(b_hh, jnp.float32)).reshape(1, 4 * H)
    bias_p = _pad_gate_cols(bias, H, Hp)                           # (1, 4Hp) f32

    gx = _input_projection(x_tbd, wih_p, bias_p)          # (Tp, Bp, 4Hp) f32
    return _lstm_recurrent(gx, whh_p, hidden_pad=Hp, seq_len=seq_len,
                           time_chunk=time_chunk, batch_tile=batch_tile)


def init_lstm_params(key, input_size, hidden_size, num_layers):
    """Deterministic params matching nn.LSTM's shapes and default U(-k, k) init."""
    params = []
    k = 1.0 / jnp.sqrt(hidden_size)
    for layer in range(num_layers):
        d_in = input_size if layer == 0 else hidden_size
        key, k1, k2, k3, k4 = jax.random.split(key, 5)
        w_ih = jax.random.uniform(k1, (4 * hidden_size, d_in), jnp.float32, -k, k)
        w_hh = jax.random.uniform(k2, (4 * hidden_size, hidden_size), jnp.float32, -k, k)
        b_ih = jax.random.uniform(k3, (4 * hidden_size,), jnp.float32, -k, k)
        b_hh = jax.random.uniform(k4, (4 * hidden_size,), jnp.float32, -k, k)
        params.append((w_ih, w_hh, b_ih, b_hh))
    return params


def lstm_encoder_forward(x_btd, params):
    """Equivalent of LSTM_encoder.forward.

    x_btd: (B, T, input_size) batch_first (like the PyTorch module)
    returns: lstm_out (B, T, H), (h_n, c_n) each (num_layers, B, H)
    """
    B, T, _ = x_btd.shape
    H = params[0][1].shape[1]                          # w_hh: (4H, H)
    Hp = _round_up(H, _LANE)
    Bp = _round_up(B, _SUBLANE)
    TC = T if T <= 32 else 32                          # time chunk
    Tp = _round_up(T, TC)
    # v7x megacore: split batch across the two TensorCores when it is big enough.
    batch_tile = Bp // 2 if (Bp % 16 == 0 and Bp >= 16) else Bp

    x = jnp.transpose(x_btd, (1, 0, 2)).astype(jnp.float32)     # (T, B, D)
    x = jnp.pad(x, ((0, Tp - T), (0, Bp - B), (0, 0)))          # (Tp, Bp, D)

    cur = x
    h_list, c_list = [], []
    for (w_ih, w_hh, b_ih, b_hh) in params:
        cur, h_n, c_n = _lstm_layer(cur, w_ih, w_hh, b_ih, b_hh,
                                    H=H, Hp=Hp, seq_len=T, time_chunk=TC,
                                    batch_tile=batch_tile)
        h_list.append(h_n[:B, :H])
        c_list.append(c_n[:B, :H])

    lstm_out = jnp.transpose(cur[:T, :B, :H], (1, 0, 2))        # (B, T, H)
    h_n = jnp.stack(h_list, axis=0)                             # (L, B, H)
    c_n = jnp.stack(c_list, axis=0)
    return lstm_out, (h_n, c_n)


# ---------------------------------------------------------------------------
# Pure-JAX reference (mirrors the bf16 matmul-operand casts, f32 everywhere else)
# ---------------------------------------------------------------------------
def _reference_lstm(x_btd, params):
    B, T, _ = x_btd.shape
    cur = jnp.transpose(x_btd, (1, 0, 2)).astype(jnp.float32)
    h_fin, c_fin = [], []
    for (w_ih, w_hh, b_ih, b_hh) in params:
        H = w_hh.shape[1]
        wih_b = jnp.asarray(w_ih, jnp.float32).astype(jnp.bfloat16)
        whh_b = jnp.asarray(w_hh, jnp.float32).astype(jnp.bfloat16)
        bias = jnp.asarray(b_ih, jnp.float32) + jnp.asarray(b_hh, jnp.float32)
        h = jnp.zeros((B, H), jnp.float32)
        c = jnp.zeros((B, H), jnp.float32)
        ys = []
        for t in range(T):
            g = (jnp.dot(cur[t].astype(jnp.bfloat16), wih_b.T,
                         preferred_element_type=jnp.float32)
                 + jnp.dot(h.astype(jnp.bfloat16), whh_b.T,
                           preferred_element_type=jnp.float32)
                 + bias)
            i = jax.nn.sigmoid(g[:, 0 * H:1 * H])
            f = jax.nn.sigmoid(g[:, 1 * H:2 * H])
            gg = jnp.tanh(g[:, 2 * H:3 * H])
            o = jax.nn.sigmoid(g[:, 3 * H:4 * H])
            c = f * c + i * gg
            h = o * jnp.tanh(c)
            ys.append(h)
        cur = jnp.stack(ys, axis=0)
        h_fin.append(h)
        c_fin.append(c)
    return (jnp.transpose(cur, (1, 0, 2)),
            (jnp.stack(h_fin, 0), jnp.stack(c_fin, 0)))


if __name__ == "__main__":
    batch, seq, input_size, hidden_size, num_layers = 2, 8, 16, 32, 2

    key = jax.random.PRNGKey(0)
    key, xkey = jax.random.split(key)
    x = jax.random.normal(xkey, (batch, seq, input_size), jnp.float32)

    params = init_lstm_params(key, input_size, hidden_size, num_layers)

    lstm_out, (h_n, c_n) = lstm_encoder_forward(x, params)
    jax.block_until_ready((lstm_out, h_n, c_n))

    # sanity check against pure-JAX reference (same bf16 operand quantization)
    ref_out, (ref_h, ref_c) = _reference_lstm(x, params)
    assert lstm_out.shape == (batch, seq, hidden_size)
    assert h_n.shape == (num_layers, batch, hidden_size)
    assert c_n.shape == (num_layers, batch, hidden_size)
    assert jnp.allclose(lstm_out, ref_out, atol=2e-3, rtol=2e-3)
    assert jnp.allclose(h_n, ref_h, atol=2e-3, rtol=2e-3)
    assert jnp.allclose(c_n, ref_c, atol=2e-3, rtol=2e-3)

    print("KERNEL_OK")
</pallas_src>

<mosaic_0001>
module attributes {stable_mosaic.version = 11 : i64} {
  func.func @_input_proj_kernel(%arg0: i32, %arg1: memref<64x16xbf16, #tpu.memory_space<vmem>>, %arg2: memref<16x512xbf16, #tpu.memory_space<vmem>>, %arg3: memref<1x512xf32, #tpu.memory_space<vmem>>, %arg4: memref<64x512xf32, #tpu.memory_space<vmem>>) attributes {dimension_semantics = [#tpu.dimension_semantics<parallel>], iteration_bounds = array<i64: 1>, scalar_prefetch = 0 : i64, scratch_operands = 0 : i64, tpu.core_type = #tpu.core_type<tc>, window_params = [{transform_indices = @transform_0, window_bounds = array<i64: 64, 16>}, {pipeline_mode = #tpu.pipeline_mode<synchronous>, transform_indices = @transform_1, window_bounds = array<i64: 16, 512>}, {pipeline_mode = #tpu.pipeline_mode<synchronous>, transform_indices = @transform_2, window_bounds = array<i64: 1, 512>}, {transform_indices = @transform_3, window_bounds = array<i64: 64, 512>}]} {
    %c0 = arith.constant 0 : index
    %c0_0 = arith.constant 0 : index
    %0 = vector.load %arg1[%c0, %c0_0] : memref<64x16xbf16, #tpu.memory_space<vmem>>, vector<64x16xbf16>
    %c0_1 = arith.constant 0 : index
    %c0_2 = arith.constant 0 : index
    %1 = vector.load %arg2[%c0_1, %c0_2] : memref<16x512xbf16, #tpu.memory_space<vmem>>, vector<16x512xbf16>
    %cst = arith.constant dense<0.000000e+00> : vector<64x512xf32>
    %2 = tpu.matmul %0, %1, %cst {dimension_numbers = #tpu.dot_dimension_numbers<[1], [0], [0], [1], [0, 0, 1, 1], [], []>} : vector<64x16xbf16>, vector<16x512xbf16>, vector<64x512xf32> -> vector<64x512xf32>
    %c0_3 = arith.constant 0 : index
    %c0_4 = arith.constant 0 : index
    %3 = vector.load %arg3[%c0_3, %c0_4] : memref<1x512xf32, #tpu.memory_space<vmem>>, vector<1x512xf32>
    %4 = vector.broadcast %3 : vector<1x512xf32> to vector<64x512xf32>
    %5 = arith.addf %2, %4 : vector<64x512xf32>
    %c0_5 = arith.constant 0 : index
    %c0_6 = arith.constant 0 : index
    %6 = vector.load %arg4[%c0_5, %c0_6] : memref<64x512xf32, #tpu.memory_space<vmem>>, vector<64x512xf32>
    tpu.vector_store %arg4[%c0_5, %c0_6], %5 {strides = array<i32>} : memref<64x512xf32, #tpu.memory_space<vmem>>, vector<64x512xf32>,
    return
  }
  func.func @transform_0(%arg0: i32) -> (i32, i32) {
    %c0_i32 = arith.constant 0 : i32
    %c0_i32_0 = arith.constant 0 : i32
    return %arg0, %c0_i32 : i32, i32
  }
  func.func @transform_1(%arg0: i32) -> (i32, i32) {
    %c0_i32 = arith.constant 0 : i32
    %c0_i32_0 = arith.constant 0 : i32
    %c0_i32_1 = arith.constant 0 : i32
    return %c0_i32, %c0_i32_0 : i32, i32
  }
  func.func @transform_2(%arg0: i32) -> (i32, i32) {
    %c0_i32 = arith.constant 0 : i32
    %c0_i32_0 = arith.constant 0 : i32
    %c0_i32_1 = arith.constant 0 : i32
    return %c0_i32, %c0_i32_0 : i32, i32
  }
  func.func @transform_3(%arg0: i32) -> (i32, i32) {
    %c0_i32 = arith.constant 0 : i32
    %c0_i32_0 = arith.constant 0 : i32
    return %arg0, %c0_i32 : i32, i32
  }
}

</mosaic_0001>

<bundles_post_ra>
// kernel: tpu_custom_call.1
= control target key start
LH: loop header
LB: loop body
LE: loop exit
PB: predicated region body
PF: predicated region fallthrough
CT: control target
= control target key end

     0   :  { %v351_v2 = vmov 0   ;;  %vm90_vm0 = vcmask 130048   ;;  %s462_s0 = inlined_call_operand.vmem [shape: bf16[64,16], index: 0, kind: input, shape index: {}]   ;;  %s463_s1 = inlined_call_operand.vmem [shape: bf16[16,512], index: 1, kind: input, shape index: {}]   ;;  %s464_s2 = inlined_call_operand.vmem [shape: f32[1,512], index: 2, kind: input, shape index: {}]   ;;  %s465_s3 = inlined_call_operand.hbm [shape: f32[64,512], index: 3, kind: output, shape index: {}]  }
   0x1   :  { %v317_v0 = vld [vmem:[%s463_s1 + $0x4] ss:$16 sps:$4 sm:$0xff]   ;;  %v319_v1 = vld [vmem:[%s463_s1 + $0xc] ss:$16 sps:$4 sm:$0xff]   ;;  %135 = vmatprep.mubr.bf16.mxu0 %v351_v2  ;;  %208 = vmatprep.mubr.bf16.mxu1 %v351_v2  ;;  %v321_v3 = vld [vmem:[%s463_s1] ss:$16 sps:$4 sm:$0xff]  }
   0x2   :  { %103 = vmatprep.subr.bf16.mxu0 %v317_v0  ;;  %v322_v4 = vld [vmem:[%s463_s1 + $0x8] ss:$16 sps:$4 sm:$0xff]   ;;  %176 = vmatprep.subr.bf16.mxu1 %v319_v1  ;;  %v323_v5 = vld [vmem:[%s462_s0] sm:$0xff]  }
   0x3   :  { %104 = vmatpush1.bf16.msra.mxu0 %v321_v3  ;;  %177 = vmatpush1.bf16.msra.mxu1 %v322_v4 }
   0x6   :  { %305 = vmatmul.mubr.msk.bf16.vlgmr.msra.gmra.mrb[0].mxu0 %vm90_vm0, %v323_v5  ;;  %309 = vmatmul.mubr.msk.bf16.vlgmr.msra.gmra.mrb[0].mxu1 %vm90_vm0, %v323_v5 }
   0x7   :  { %8 = vsyncpa [#allocation3], 0  ;;  %145 = vmatprep.mubr.bf16.mxu0 %v351_v2  ;;  %218 = vmatprep.mubr.bf16.mxu1 %v351_v2  ;;  %v324_v6 = vld [vmem:[%s462_s0 + $0x8] sm:$0xff]   ;;  %v325_v7 = vld [vmem:[%s462_s0 + $0x10] sm:$0xff]   ;;  %v30_v9 = vlaneseq }
   0x8   :  { %v326_v8 = vld [vmem:[%s462_s0 + $0x18] sm:$0xff]   ;;  %v28_v13 = vld [vmem:[%s464_s2] sm:$0xf]  ;;  %s352_s0 = smov [#allocation2]  }
   0x9   :  { %v31_v10 = vshrl.u32 %v30_v9, 7  ;;  %s286_s2 = sshll.u32 %s352_s0, 4  ;;  %s287_s2 = int_to_ptr.vmem [resolvable:$true] %s286_s2 }
   0xa   :  { %s327_s29 = scalar_lea.vmem %s287_s2, 4096  ;;  %p332_p1 = scmp.lt.s32.totalorder %s287_s2, %s287_s2 }
   0xb   :  { %v32_v11 = vsub.s32 0, %v31_v10  ;;  %v40_v12 = vsub.s32 2, %v31_v10  ;;  %v36_v14 = vsub.s32 1, %v31_v10  ;;  %v44_v15 = vsub.s32 3, %v31_v10  ;;  %p328_p0 = scmp.ne.s32.totalorder %s287_s2, %s327_s29  ;;  %p333_p2 = scmp.lt.s32.totalorder %s327_s29, %s327_s29 }
   0xd   :  { %v410_v16 = vrot.slane %v28_v13, %v32_v11  ;;  %v412_v17 = vrot.slane %v28_v13, %v40_v12  ;;  %v414_v18 = vrot.slane %v28_v13, %v36_v14  ;;  %v416_v19 = vrot.slane %v28_v13, %v44_v15  ;;  %p334_p3 = por %p333_p2, %p332_p1 }
   0xe   :  { %306 = vmatmul.mubr.msk.bf16.gmra.mrb[4].mxu0 %vm90_vm0, %v324_v6  ;;  %310 = vmatmul.mubr.msk.bf16.gmra.mrb[4].mxu1 %vm90_vm0, %v324_v6 }
   0xf   :  { %155 = vmatprep.mubr.bf16.mxu0 %v351_v2  ;;  %228 = vmatprep.mubr.bf16.mxu1 %v351_v2  ;;  %p335_p4 = pnand %p334_p3, %p328_p0 }
  0x16   :  { %307 = vmatmul.mubr.msk.bf16.gmra.mrb[8].mxu0 %vm90_vm0, %v325_v7  ;;  %311 = vmatmul.mubr.msk.bf16.gmra.mrb[8].mxu1 %vm90_vm0, %v325_v7 }
  0x17   :  { %165 = vmatprep.mubr.bf16.mxu0 %v351_v2  ;;  %238 = vmatprep.mubr.bf16.mxu1 %v351_v2 }
  0x1e   :  { %308 = vmatmul.mubr.msk.bf16.gmra.mrb[12].mxu0 %vm90_vm0, %v326_v8  ;;  %312 = vmatmul.mubr.msk.bf16.gmra.mrb[12].mxu1 %vm90_vm0, %v326_v8 }
  0xd9   :  { %v137_v20 = vpop.f32.mrb[0].mxu0  ;;  %v210_v21 = vpop.f32.mrb[0].mxu1 }
  0xda   :  { %v138_v22 = vadd.f32 %v137_v20, %v410_v16  ;;  %v211_v23 = vadd.f32 %v210_v21, %v412_v17  ;;  %v139_v24 = vpop.f32.mrb[1].mxu0  ;;  %v212_v25 = vpop.f32.mrb[1].mxu1 }
  0xdb   :  { %v140_v26 = vadd.f32 %v139_v24, %v414_v18  ;;  %v213_v27 = vadd.f32 %v212_v25, %v416_v19  ;;  %v141_v28 = vpop.f32.mrb[2].mxu0  ;;  %v214_v29 = vpop.f32.mrb[2].mxu1 }
  0xdc   :  { %249 = vst [vmem:[#allocation2] sm:$0xff] %v138_v22  ;;  %251 = vst [vmem:[#allocation2 + $0x10] sm:$0xff] %v211_v23  ;;  %v142_v30 = vadd.f32 %v141_v28, %v410_v16  ;;  %v215_v31 = vadd.f32 %v214_v29, %v412_v17  ;;  %v143_v32 = vpop.f32.mrb[3].mxu0  ;;  %v216_v33 = vpop.f32.mrb[3].mxu1 }
  0xdd   :  { %250 = vst [vmem:[#allocation2 + $0x8] sm:$0xff] %v140_v26  ;;  %252 = vst [vmem:[#allocation2 + $0x18] sm:$0xff] %v213_v27  ;;  %v144_v34 = vadd.f32 %v143_v32, %v414_v18  ;;  %v217_v35 = vadd.f32 %v216_v33, %v416_v19 }
  0xde   :  { %253 = vst [vmem:[#allocation2 + $0x20] sm:$0xff] %v142_v30  ;;  %255 = vst [vmem:[#allocation2 + $0x30] sm:$0xff] %v215_v31 }
  0xdf   :  { %254 = vst [vmem:[#allocation2 + $0x28] sm:$0xff] %v144_v34  ;;  %256 = vst [vmem:[#allocation2 + $0x38] sm:$0xff] %v217_v35 }
  0xe1   :  { %v147_v36 = vpop.f32.mrb[4].mxu0  ;;  %v220_v37 = vpop.f32.mrb[4].mxu1 }
  0xe2   :  { %v148_v38 = vadd.f32 %v147_v36, %v410_v16  ;;  %v221_v39 = vadd.f32 %v220_v37, %v412_v17  ;;  %v149_v40 = vpop.f32.mrb[5].mxu0  ;;  %v222_v41 = vpop.f32.mrb[5].mxu1 }
  0xe3   :  { %v150_v42 = vadd.f32 %v149_v40, %v414_v18  ;;  %v223_v43 = vadd.f32 %v222_v41, %v416_v19  ;;  %v151_v44 = vpop.f32.mrb[6].mxu0  ;;  %v224_v45 = vpop.f32.mrb[6].mxu1 }
  0xe4   :  { %257 = vst [vmem:[#allocation2 + $0x40] sm:$0xff] %v148_v38  ;;  %259 = vst [vmem:[#allocation2 + $0x50] sm:$0xff] %v221_v39  ;;  %v152_v46 = vadd.f32 %v151_v44, %v410_v16  ;;  %v225_v47 = vadd.f32 %v224_v45, %v412_v17  ;;  %v153_v48 = vpop.f32.mrb[7].mxu0  ;;  %v226_v49 = vpop.f32.mrb[7].mxu1 }
  0xe5   :  { %258 = vst [vmem:[#allocation2 + $0x48] sm:$0xff] %v150_v42  ;;  %260 = vst [vmem:[#allocation2 + $0x58] sm:$0xff] %v223_v43  ;;  %v154_v50 = vadd.f32 %v153_v48, %v414_v18  ;;  %v227_v51 = vadd.f32 %v226_v49, %v416_v19 }
  0xe6   :  { %261 = vst [vmem:[#allocation2 + $0x60] sm:$0xff] %v152_v46  ;;  %263 = vst [vmem:[#allocation2 + $0x70] sm:$0xff] %v225_v47 }
  0xe7   :  { %262 = vst [vmem:[#allocation2 + $0x68] sm:$0xff] %v154_v50  ;;  %264 = vst [vmem:[#allocation2 + $0x78] sm:$0xff] %v227_v51 }
  0xe9   :  { %v157_v52 = vpop.f32.mrb[8].mxu0  ;;  %v230_v53 = vpop.f32.mrb[8].mxu1 }
  0xea   :  { %v158_v54 = vadd.f32 %v157_v52, %v410_v16  ;;  %v231_v55 = vadd.f32 %v230_v53, %v412_v17  ;;  %v159_v56 = vpop.f32.mrb[9].mxu0  ;;  %v232_v57 = vpop.f32.mrb[9].mxu1 }
  0xeb   :  { %v160_v58 = vadd.f32 %v159_v56, %v414_v18  ;;  %v233_v59 = vadd.f32 %v232_v57, %v416_v19  ;;  %v161_v60 = vpop.f32.mrb[10].mxu0  ;;  %v234_v61 = vpop.f32.mrb[10].mxu1 }
  0xec   :  { %265 = vst [vmem:[#allocation2 + $0x80] sm:$0xff] %v158_v54  ;;  %267 = vst [vmem:[#allocation2 + $0x90] sm:$0xff] %v231_v55  ;;  %v162_v62 = vadd.f32 %v161_v60, %v410_v16  ;;  %v235_v63 = vadd.f32 %v234_v61, %v412_v17  ;;  %v163_v0 = vpop.f32.mrb[11].mxu0  ;;  %v236_v1 = vpop.f32.mrb[11].mxu1 }
  0xed   :  { %266 = vst [vmem:[#allocation2 + $0x88] sm:$0xff] %v160_v58  ;;  %268 = vst [vmem:[#allocation2 + $0x98] sm:$0xff] %v233_v59  ;;  %v164_v2 = vadd.f32 %v163_v0, %v414_v18  ;;  %v237_v3 = vadd.f32 %v236_v1, %v416_v19 }
  0xee   :  { %269 = vst [vmem:[#allocation2 + $0xa0] sm:$0xff] %v162_v62  ;;  %271 = vst [vmem:[#allocation2 + $0xb0] sm:$0xff] %v235_v63 }
  0xef   :  { %270 = vst [vmem:[#allocation2 + $0xa8] sm:$0xff] %v164_v2  ;;  %272 = vst [vmem:[#allocation2 + $0xb8] sm:$0xff] %v237_v3 }
  0xf1   :  { %v167_v4 = vpop.f32.mrb[12].mxu0  ;;  %v240_v5 = vpop.f32.mrb[12].mxu1 }
  0xf2   :  { %v168_v6 = vadd.f32 %v167_v4, %v410_v16  ;;  %v241_v7 = vadd.f32 %v240_v5, %v412_v17  ;;  %v169_v8 = vpop.f32.mrb[13].mxu0  ;;  %v242_v9 = vpop.f32.mrb[13].mxu1 }
  0xf3   :  { %v170_v10 = vadd.f32 %v169_v8, %v414_v18  ;;  %v243_v11 = vadd.f32 %v242_v9, %v416_v19  ;;  %v171_v12 = vpop.f32.mrb[14].mxu0  ;;  %v244_v13 = vpop.f32.mrb[14].mxu1 }
  0xf4   :  { %273 = vst [vmem:[#allocation2 + $0xc0] sm:$0xff] %v168_v6  ;;  %275 = vst [vmem:[#allocation2 + $0xd0] sm:$0xff] %v241_v7  ;;  %v172_v14 = vadd.f32 %v171_v12, %v410_v16  ;;  %v245_v15 = vadd.f32 %v244_v13, %v412_v17  ;;  %v173_v20 = vpop.f32.mrb[15].mxu0  ;;  %v246_v21 = vpop.f32.mrb[15].mxu1 }
  0xf5   :  { %274 = vst [vmem:[#allocation2 + $0xc8] sm:$0xff] %v170_v10  ;;  %276 = vst [vmem:[#allocation2 + $0xd8] sm:$0xff] %v243_v11  ;;  %v174_v22 = vadd.f32 %v173_v20, %v414_v18  ;;  %v247_v23 = vadd.f32 %v246_v21, %v416_v19 }
  0xf6   :  { %277 = vst [vmem:[#allocation2 + $0xe0] sm:$0xff] %v172_v14  ;;  %279 = vst [vmem:[#allocation2 + $0xf0] sm:$0xff] %v245_v15 }
  0xf7   :  { %278 = vst [vmem:[#allocation2 + $0xe8] sm:$0xff] %v174_v22  ;;  %280 = vst [vmem:[#allocation2 + $0xf8] sm:$0xff] %v247_v23 }
  0xf8   :  { %338 = shalt.err (!%p335_p4)
}
  0xf9   :  { %s339_s5 = scalar_lea.hbm %s465_s3, 4096 }
  0xfa   :  { %p340_p5 = scmp.ne.s32.totalorder %s465_s3, %s339_s5  ;;  %p343_p6 = scmp.lt.u32.totalorder %s339_s5, %s465_s3 }
  0xfc   :  { %p345_p7 = pnand %p343_p6, %p340_p5 }
  0xfe   :  { %348 = shalt.err (!%p345_p7)
}
  0xff   :  { %s353_s10 = smov 512   ;;  %s354_s11 = smov 32  }
 0x100   :  { %292 = dma.vmem_to_hbm [thread:$0]  %s287_s2, 4096, %s465_s3, [#allocation3], %s353_s10, %s353_s10, %s354_s11  }
 0x101   :  { %349 = dma.done.wait [#allocation3], 4096  }
 0x102   :  { %350 = vsyncadd [#allocation3], 4294963200 }
 0x103   :  { %296 = vsyncpa [#allocation3], 1 }

</bundles_post_ra>
